<compile_context>
chip_gen: v7x
topology: tpu7x:2x2x1
jax: 0.10.0
libtpu: 0.0.40
codegen_flags: <defaults>
</compile_context>

<pallas_src>
import functools
import math

import jax
import jax.numpy as jnp
from jax.experimental import pallas as pl
from jax.experimental.pallas import tpu as pltpu


def make_positional_embedding(emb_size: int, maxlen: int = 5000) -> jnp.ndarray:
    """Builds the buffer exactly as PositionalEncoding.__init__ does: (maxlen, emb_size)."""
    Tk_over_2pi = jnp.exp(
        -jnp.arange(0, emb_size, 2, dtype=jnp.float32) * (math.log(10000.0) / emb_size)
    )
    t = jnp.arange(maxlen, dtype=jnp.float32).reshape(maxlen, 1)
    outer = t * Tk_over_2pi                                    # (maxlen, emb_size // 2)
    pe = jnp.zeros((maxlen, emb_size), dtype=jnp.float32)
    pe = pe.at[:, 0::2].set(jnp.sin(outer))
    pe = pe.at[:, 1::2].set(jnp.cos(outer))
    return pe


def _dropout_threshold(rate: float) -> jnp.uint32:
    return jnp.uint32(min(int(round(rate * float(2 ** 32))), 2 ** 32 - 1))


# ---------------- kernels (lane-dense 2-D blocks) ----------------
# x_ref / o_ref: (ts, B*E)   pe_ref: (ts, E) in the stored table dtype.

def _pe_add_kernel(x_ref, pe_ref, o_ref, *, batch, emb):
    pe = pe_ref[...].astype(o_ref.dtype)          # per-block cast, hidden under DMA
    for b in range(batch):                        # static loop; static, lane-aligned offsets
        sl = pl.ds(b * emb, emb)
        o_ref[:, sl] = x_ref[:, sl] + pe


def _pe_add_dropout_hwprng_kernel(seed_ref, x_ref, pe_ref, o_ref, *, batch, emb, rate):
    # Training-mode nn.Dropout (inverted dropout) using the TPU hardware PRNG.
    # Single grid axis -> program_id(0) uniquely identifies the block (distinct streams).
    pltpu.prng_seed(seed_ref[0] + pl.program_id(0))
    pe = pe_ref[...].astype(o_ref.dtype)
    threshold = _dropout_threshold(rate)
    scale = jnp.asarray(1.0 / (1.0 - rate), o_ref.dtype)
    for b in range(batch):
        sl = pl.ds(b * emb, emb)
        y = x_ref[:, sl] + pe
        bits = pltpu.prng_random_bits(y.shape)
        if bits.dtype != jnp.uint32:
            bits = pltpu.bitcast(bits, jnp.uint32)     # pure reinterpret, no convert
        keep = bits >= threshold
        # Minimal epilogue (compare + select + mul) so v5e stays DMA-bound.
        o_ref[:, sl] = jnp.where(keep, y * scale, jnp.zeros_like(y))


def _pe_add_dropout_bits_kernel(x_ref, pe_ref, bits_ref, o_ref, *, batch, emb, rate):
    # Portable dropout path: random bits streamed in as an input (no TPU-only primitives).
    pe = pe_ref[...].astype(o_ref.dtype)
    threshold = _dropout_threshold(rate)
    scale = jnp.asarray(1.0 / (1.0 - rate), o_ref.dtype)
    for b in range(batch):
        sl = pl.ds(b * emb, emb)
        y = x_ref[:, sl] + pe
        keep = bits_ref[:, sl] >= threshold
        o_ref[:, sl] = jnp.where(keep, y * scale, jnp.zeros_like(y))


# ---------------- wrapper ----------------

def _choose_seq_tile(seq_len: int, bytes_per_row: int, itemsize: int,
                     target_bytes: int = 4 << 20) -> int:
    """Rows per sequence tile: ~target_bytes of x per block, dtype-aware sublane alignment."""
    granule = max(8, 32 // max(int(itemsize), 1))     # 8 rows f32, 16 bf16, 32 int8/fp8
    if seq_len <= granule:
        return seq_len                                # tiny sequences: one (small) block
    ts = (target_bytes // max(bytes_per_row, 1)) // granule * granule
    ts = max(granule, ts)
    # v7x: the "parallel" seq axis shards blocks across the 2 TensorCores, so make sure
    # there are at least 2 grid steps when S allows it (no-op on v5e/v6e).
    if ts >= seq_len:
        if seq_len >= 2 * granule:
            ts = max(granule, (seq_len // 2) // granule * granule)
        else:
            ts = granule
    return min(ts, seq_len)


def positional_encoding(token_embedding, pos_embedding, *, dropout: float = 0.1,
                        training: bool = False, seed: int = 0, seq_tile: int | None = None):
    """forward(): token_embedding + pos_embedding[:seq_len] followed by dropout."""
    S, B, E = token_embedding.shape
    maxlen, E_pe = pos_embedding.shape
    assert E_pe == E and S <= maxlen
    dtype = token_embedding.dtype

    if dropout < 0.0 or dropout > 1.0:
        raise ValueError(f"dropout rate must be in [0, 1], got {dropout}")
    apply_dropout = training and dropout > 0.0
    if apply_dropout and dropout >= 1.0:
        # nn.Dropout(p=1.0) zeroes everything; avoid the inf scale.
        return jnp.zeros_like(token_embedding)

    # Lane-dense layout: fold batch into the lane axis (free, contiguous reshape).
    x2d = token_embedding.reshape(S, B * E)
    itemsize = token_embedding.dtype.itemsize
    pe_itemsize = pos_embedding.dtype.itemsize
    bytes_per_row = B * E * itemsize

    ts = seq_tile if seq_tile is not None else _choose_seq_tile(S, bytes_per_row, itemsize)
    ts = max(1, min(ts, S))
    grid = (pl.cdiv(S, ts),)
    out_shape = jax.ShapeDtypeStruct((S, B * E), dtype)

    use_hw_prng = apply_dropout and jax.default_backend() == "tpu"
    bits_bytes = S * B * E * 4 if (apply_dropout and not use_hw_prng) else 0

    # Explicit VMEM budget: x + out (+ bits) blocks double-buffered, plus the small pe block.
    x_blk = ts * B * E * itemsize
    pe_blk = ts * E * pe_itemsize
    bits_blk = ts * B * E * 4 if bits_bytes else 0
    footprint = 2 * (2 * x_blk + pe_blk + bits_blk)
    vmem_limit = int(min(64 << 20, max(32 << 20, footprint * 3 // 2)))

    cparams = pltpu.CompilerParams(dimension_semantics=("parallel",),
                                   vmem_limit_bytes=vmem_limit)
    cost = pl.CostEstimate(
        flops=2 * S * B * E,
        transcendentals=0,
        bytes_accessed=2 * S * B * E * itemsize + S * E * pe_itemsize + bits_bytes)

    if not apply_dropout:
        # Eval-mode dropout is identity (matches nn.Dropout in eval()).
        x_spec = pl.BlockSpec((ts, B * E), lambda i: (i, 0))
        pe_spec = pl.BlockSpec((ts, E), lambda i: (i, 0))
        out2d = pl.pallas_call(
            functools.partial(_pe_add_kernel, batch=B, emb=E),
            grid=grid,
            in_specs=[x_spec, pe_spec],
            out_specs=x_spec,
            out_shape=out_shape,
            compiler_params=cparams,
            cost_estimate=cost,
        )(x2d, pos_embedding)
        return out2d.reshape(S, B, E)

    if use_hw_prng:
        # TPU path: seed is scalar-prefetched into SMEM; index_maps receive it as a
        # trailing positional arg; per-block PRNG streams derived from the grid index.
        kern = functools.partial(_pe_add_dropout_hwprng_kernel,
                                 batch=B, emb=E, rate=float(dropout))
        x_spec = pl.BlockSpec((ts, B * E), lambda i, seed_ref: (i, 0))
        pe_spec = pl.BlockSpec((ts, E), lambda i, seed_ref: (i, 0))
        seed_arr = jnp.array([seed], dtype=jnp.int32)
        out2d = pl.pallas_call(
            kern,
            grid_spec=pltpu.PrefetchScalarGridSpec(
                num_scalar_prefetch=1,
                grid=grid,
                in_specs=[x_spec, pe_spec],
                out_specs=x_spec),
            out_shape=out_shape,
            compiler_params=cparams,
            cost_estimate=cost,
        )(seed_arr, x2d, pos_embedding)
        return out2d.reshape(S, B, E)

    # Portable fallback (CPU / interpret mode, where pltpu.prng_seed has no lowering):
    # generate the dropout bits once and stream them through the same pipeline.
    bits2d = jax.random.bits(jax.random.PRNGKey(seed), (S, B * E), dtype=jnp.uint32)
    kern = functools.partial(_pe_add_dropout_bits_kernel,
                             batch=B, emb=E, rate=float(dropout))
    x_spec = pl.BlockSpec((ts, B * E), lambda i: (i, 0))
    pe_spec = pl.BlockSpec((ts, E), lambda i: (i, 0))
    out2d = pl.pallas_call(
        kern,
        grid=grid,
        in_specs=[x_spec, pe_spec, x_spec],
        out_specs=x_spec,
        out_shape=out_shape,
        compiler_params=cparams,
        cost_estimate=cost,
    )(x2d, pos_embedding, bits2d)
    return out2d.reshape(S, B, E)


if __name__ == "__main__":
    emb_size = 32
    maxlen = 64
    batch = 2

    key = jax.random.PRNGKey(0)
    k1, k2, k3 = jax.random.split(key, 3)
    pos_embedding = make_positional_embedding(emb_size, maxlen)

    # 1) Eval mode (dropout = identity), small single-tile case, auto tile choice.
    x1 = jax.random.normal(k1, (8, batch, emb_size), dtype=jnp.float32)
    out1 = jax.block_until_ready(positional_encoding(x1, pos_embedding, training=False))
    ref1 = x1 + pos_embedding[:8][:, None, :]
    assert out1.shape == (8, batch, emb_size)
    assert jnp.allclose(out1, ref1, atol=1e-6, rtol=1e-6)

    # 2) Eval mode with an explicit multi-step grid: even split and ragged tail.
    for S in (48, 40):
        x = jax.random.normal(k2, (S, batch, emb_size), dtype=jnp.float32)
        out = jax.block_until_ready(
            positional_encoding(x, pos_embedding, training=False, seq_tile=16))
        ref = x + pos_embedding[:S][:, None, :]
        assert jnp.allclose(out, ref, atol=1e-6, rtol=1e-6)

    # 3) Training-mode dropout sanity: every element is 0 or (x + pe) / (1 - p).
    p = 0.25
    x3 = jax.random.normal(k3, (16, batch, emb_size), dtype=jnp.float32)
    out3 = jax.block_until_ready(
        positional_encoding(x3, pos_embedding, dropout=p, training=True, seed=123, seq_tile=8))
    ref3 = (x3 + pos_embedding[:16][:, None, :]) / (1.0 - p)
    ok = jnp.isclose(out3, 0.0) | jnp.isclose(out3, ref3, atol=1e-5, rtol=1e-5)
    assert bool(jnp.all(ok))
    n_zero = int(jnp.sum(jnp.isclose(out3, 0.0)))
    assert 0 < n_zero < out3.size      # some dropped, some kept

    # 4) Dropout edge case p=1.0 -> all zeros (matches nn.Dropout(p=1)).
    out4 = jax.block_until_ready(
        positional_encoding(x3, pos_embedding, dropout=1.0, training=True, seed=7))
    assert bool(jnp.all(out4 == 0.0))

    print("KERNEL_OK")
</pallas_src>

<mosaic_0001>
module attributes {stable_mosaic.version = 11 : i64} {
  func.func @_pe_add_kernel(%arg0: i32, %arg1: memref<8x64xf32, #tpu.memory_space<vmem>>, %arg2: memref<8x32xf32, #tpu.memory_space<vmem>>, %arg3: memref<8x64xf32, #tpu.memory_space<vmem>>) attributes {dimension_semantics = [#tpu.dimension_semantics<parallel>], iteration_bounds = array<i64: 1>, scalar_prefetch = 0 : i64, scratch_operands = 0 : i64, tpu.core_type = #tpu.core_type<tc>, window_params = [{transform_indices = @transform_0, window_bounds = array<i64: 8, 64>}, {transform_indices = @transform_1, window_bounds = array<i64: 8, 32>}, {transform_indices = @transform_2, window_bounds = array<i64: 8, 64>}]} {
    %c0 = arith.constant 0 : index
    %c0_0 = arith.constant 0 : index
    %0 = vector.load %arg2[%c0, %c0_0] : memref<8x32xf32, #tpu.memory_space<vmem>>, vector<8x32xf32>
    %c0_1 = arith.constant 0 : index
    %c0_2 = arith.constant 0 : index
    %1 = vector.load %arg1[%c0_1, %c0_2] : memref<8x64xf32, #tpu.memory_space<vmem>>, vector<8x32xf32>
    %2 = arith.addf %1, %0 : vector<8x32xf32>
    %c0_3 = arith.constant 0 : index
    %c0_4 = arith.constant 0 : index
    %3 = vector.load %arg3[%c0_3, %c0_4] : memref<8x64xf32, #tpu.memory_space<vmem>>, vector<8x32xf32>
    tpu.vector_store %arg3[%c0_3, %c0_4], %2 {strides = array<i32>} : memref<8x64xf32, #tpu.memory_space<vmem>>, vector<8x32xf32>,
    %c0_5 = arith.constant 0 : index
    %c32 = arith.constant 32 : index
    %4 = vector.load %arg1[%c0_5, %c32] : memref<8x64xf32, #tpu.memory_space<vmem>>, vector<8x32xf32>
    %5 = arith.addf %4, %0 : vector<8x32xf32>
    %c0_6 = arith.constant 0 : index
    %c32_7 = arith.constant 32 : index
    %6 = vector.load %arg3[%c0_6, %c32_7] : memref<8x64xf32, #tpu.memory_space<vmem>>, vector<8x32xf32>
    tpu.vector_store %arg3[%c0_6, %c32_7], %5 {strides = array<i32>} : memref<8x64xf32, #tpu.memory_space<vmem>>, vector<8x32xf32>,
    return
  }
  func.func @transform_0(%arg0: i32) -> (i32, i32) {
    %c0_i32 = arith.constant 0 : i32
    %c0_i32_0 = arith.constant 0 : i32
    return %arg0, %c0_i32 : i32, i32
  }
  func.func @transform_1(%arg0: i32) -> (i32, i32) {
    %c0_i32 = arith.constant 0 : i32
    %c0_i32_0 = arith.constant 0 : i32
    return %arg0, %c0_i32 : i32, i32
  }
  func.func @transform_2(%arg0: i32) -> (i32, i32) {
    %c0_i32 = arith.constant 0 : i32
    %c0_i32_0 = arith.constant 0 : i32
    return %arg0, %c0_i32 : i32, i32
  }
}

</mosaic_0001>

<bundles_post_ra>
// kernel: tpu_custom_call.1
= control target key start
LH: loop header
LB: loop body
LE: loop exit
PB: predicated region body
PF: predicated region fallthrough
CT: control target
= control target key end

     0   :  { %vm15_vm0 = vcmask 261120   ;;  %s100_s0 = inlined_call_operand.vmem [shape: f32[8,64], index: 0, kind: input, shape index: {}]   ;;  %s101_s1 = inlined_call_operand.vmem [shape: f32[64,32], index: 1, kind: input, shape index: {}]   ;;  %s102_s2 = inlined_call_operand.hbm [shape: f32[8,64], index: 2, kind: output, shape index: {}]  }
   0x1   :  { %v12_v0 = vld [vmem:[%s101_s1] sm:$0xff] }
   0x2   :  { %v13_v1 = vld [vmem:[%s100_s0] sm:$0xff] }
   0x3   :  { %7 = vsyncpa [#allocation3], 0  ;;  %v14_v2 = vadd.f32 %v13_v1, %v12_v0  ;;  %s65_s13 = smov 32   ;;  %s66_s14 = smov [#allocation2]   ;;  %vm23_vm1 = vcmask 523520  }
   0x4   :  { %19 = vrot.lane.b32.xlu0 %v12_v0, %s65_s13  ;;  %s31_s15 = sshll.u32 %s66_s14, 4  ;;  %s32_s15 = int_to_ptr.vmem [resolvable:$true] %s31_s15 }
   0x5   :  { %16 = vst.msk [vmem:[#allocation2] sm:$0xff] %vm15_vm0, %v14_v2  ;;  %s41_s16 = scalar_lea.vmem %s32_s15, 128  ;;  %p46_p1 = scmp.lt.s32.totalorder %s32_s15, %s32_s15 }
   0x6   :  { %p42_p0 = scmp.ne.s32.totalorder %s32_s15, %s41_s16  ;;  %p47_p2 = scmp.lt.s32.totalorder %s41_s16, %s41_s16 }
   0x8   :  { %p48_p3 = por %p47_p2, %p46_p1 }
   0xa   :  { %p49_p4 = pnand %p48_p3, %p42_p0 }
  0x76   :  { %v20_v3 = vpop.permute.xlu0 %19 }
  0x77   :  { %v22_v4 = vadd.f32 %v20_v3, %v13_v1 }
  0x79   :  { %24 = vst.msk [vmem:[#allocation2] sm:$0xff] %vm23_vm1, %v22_v4 }
  0x7a   :  { %52 = shalt.err (!%p49_p4)
}
  0x7b   :  { %s53_s17 = scalar_lea.hbm %s102_s2, 128 }
  0x7c   :  { %p54_p5 = scmp.ne.s32.totalorder %s102_s2, %s53_s17  ;;  %p57_p6 = scmp.lt.u32.totalorder %s53_s17, %s102_s2 }
  0x7e   :  { %p59_p7 = pnand %p57_p6, %p54_p5 }
  0x80   :  { %62 = shalt.err (!%p59_p7)
}
  0x81   :  { %34 = dma.vmem_to_hbm [thread:$0]  %s32_s15, 128, %s102_s2, [#allocation3]  }
  0x82   :  { %63 = dma.done.wait [#allocation3], 128  }
  0x83   :  { %64 = vsyncadd [#allocation3], 4294967168 }
  0x84   :  { %38 = vsyncpa [#allocation3], 1 }

</bundles_post_ra>
